<compile_context>
chip_gen: v7x
topology: tpu7x:2x2x1
jax: 0.10.0
libtpu: 0.0.40
codegen_flags: <defaults>
</compile_context>

<pallas_src>
import jax
import jax.numpy as jnp
from jax.experimental import pallas as pl
from jax.experimental.pallas import tpu as pltpu


# ----------------------------------------------------------------------------
# Kernel
# ----------------------------------------------------------------------------
def _awl_kernel(p_ref, l_ref, out_ref):
    p = p_ref[...]                                 # (1, num) f32 params
    l = l_ref[...]                                 # (1, num) f32 task losses
    p2 = p * p
    # 0.5 / p^2 * loss + log(1 + p^2)  -- exactly the PyTorch forward expression.
    # (jnp.log1p(p2) would be the more precise form if p could approach ~1e-4.)
    term = 0.5 / p2 * l + jnp.log(1.0 + p2)
    out_ref[0, 0] = jnp.sum(term)                  # scalar reduce -> SMEM store


def _awl_forward_pallas(params_2d: jax.Array, losses_2d: jax.Array) -> jax.Array:
    """params_2d / losses_2d: (1, num) f32.  Returns scalar f32."""
    num = params_2d.shape[1]
    out = pl.pallas_call(
        _awl_kernel,
        out_shape=jax.ShapeDtypeStruct((1, 1), jnp.float32),
        in_specs=[
            pl.BlockSpec((1, num), lambda: (0, 0)),        # full-array block (legal:
            pl.BlockSpec((1, num), lambda: (0, 0)),        # block == array dims)
        ],
        out_specs=pl.BlockSpec(memory_space=pltpu.MemorySpace.SMEM),
        cost_estimate=pl.CostEstimate(
            flops=6 * num, transcendentals=num, bytes_accessed=8 * num + 4
        ),
    )(params_2d, losses_2d)
    return out[0, 0]


# ----------------------------------------------------------------------------
# custom_vjp so the loss is differentiable w.r.t. params (and losses), like the
# nn.Parameter in the PyTorch module.  Backward is pure jnp (no pallas needed).
# ----------------------------------------------------------------------------
@jax.custom_vjp
def _awl(params: jax.Array, losses: jax.Array) -> jax.Array:
    return _awl_forward_pallas(params.reshape(1, -1), losses.reshape(1, -1))


def _awl_fwd(params, losses):
    out = _awl_forward_pallas(params.reshape(1, -1), losses.reshape(1, -1))
    return out, (params, losses)


def _awl_bwd(res, g):
    p, l = res
    p2 = p * p
    d_p = g * (-l / (p2 * p) + 2.0 * p / (1.0 + p2))   # d/dp [0.5 l p^-2 + log(1+p^2)]
    d_l = g * (0.5 / p2)                               # d/dl [0.5 l / p^2]
    return d_p, d_l


_awl.defvjp(_awl_fwd, _awl_bwd)


# ----------------------------------------------------------------------------
# Public wrappers
# ----------------------------------------------------------------------------
def automatic_weighted_loss(params: jax.Array, losses: jax.Array) -> jax.Array:
    """params: (num,) f32 learnable weights; losses: (num,) stacked task losses."""
    params = jnp.asarray(params, jnp.float32).reshape(-1)
    losses = jnp.asarray(losses, jnp.float32).reshape(-1)
    assert params.shape == losses.shape, "number of losses must match number of params"
    return _awl(params, losses)


def automatic_weighted_loss_from_scalars(params: jax.Array, *losses) -> jax.Array:
    """Convenience matching AutomaticWeightedLoss.forward(*x) with scalar losses."""
    losses_arr = jnp.stack([jnp.asarray(l, jnp.float32).reshape(()) for l in losses])
    return automatic_weighted_loss(params, losses_arr)


def automatic_weighted_loss_reference(params: jax.Array, losses: jax.Array) -> jax.Array:
    """Plain-jnp reference (recommended in production: fuses with neighboring ops)."""
    params = jnp.asarray(params, jnp.float32)
    losses = jnp.asarray(losses, jnp.float32)
    p2 = params * params
    return jnp.sum(0.5 / p2 * losses + jnp.log(1.0 + p2))


# ----------------------------------------------------------------------------
# Self-test
# ----------------------------------------------------------------------------
if __name__ == "__main__":
    num = 2

    # Deterministic parameter init, matching nn.Parameter(torch.ones(num)).
    params = jnp.ones((num,), dtype=jnp.float32)

    # Deterministic example multi-task losses (positive scalars), as one array.
    key = jax.random.PRNGKey(0)
    losses = jax.random.uniform(key, (num,), dtype=jnp.float32, minval=0.5, maxval=3.0)

    # Forward through the Pallas kernel.
    out = automatic_weighted_loss(params, losses)
    out = jax.block_until_ready(out)

    # Forward check against the plain-JAX reference (same math as PyTorch forward).
    ref = automatic_weighted_loss_reference(params, losses)
    assert jnp.allclose(out, ref, rtol=1e-6, atol=1e-6), (out, ref)

    # Varargs API (matches AutomaticWeightedLoss.forward(*x)) agrees too.
    out_var = automatic_weighted_loss_from_scalars(params, losses[0], losses[1])
    out_var = jax.block_until_ready(out_var)
    assert jnp.allclose(out_var, ref, rtol=1e-6, atol=1e-6), (out_var, ref)

    # Gradient check: custom_vjp makes jax.grad work through the pallas_call.
    g_kernel = jax.grad(lambda p: automatic_weighted_loss(p, losses))(params)
    g_ref = jax.grad(lambda p: automatic_weighted_loss_reference(p, losses))(params)
    g_kernel = jax.block_until_ready(g_kernel)
    assert jnp.allclose(g_kernel, g_ref, rtol=1e-5, atol=1e-6), (g_kernel, g_ref)

    print("KERNEL_OK")
</pallas_src>

<mosaic_0001>
module attributes {stable_mosaic.version = 11 : i64} {
  func.func @_awl_kernel(%arg0: memref<1x2xf32, #tpu.memory_space<vmem>>, %arg1: memref<1x2xf32, #tpu.memory_space<vmem>>, %arg2: memref<1x1xf32, #tpu.memory_space<smem>>) attributes {dimension_semantics = [], scalar_prefetch = 0 : i64, scratch_operands = 0 : i64, tpu.core_type = #tpu.core_type<tc>} {
    %c0 = arith.constant 0 : index
    %c0_0 = arith.constant 0 : index
    %0 = vector.load %arg0[%c0, %c0_0] : memref<1x2xf32, #tpu.memory_space<vmem>>, vector<1x2xf32>
    %c0_1 = arith.constant 0 : index
    %c0_2 = arith.constant 0 : index
    %1 = vector.load %arg1[%c0_1, %c0_2] : memref<1x2xf32, #tpu.memory_space<vmem>>, vector<1x2xf32>
    %2 = arith.mulf %0, %0 : vector<1x2xf32>
    %cst = arith.constant 5.000000e-01 : f32
    %3 = vector.broadcast %cst : f32 to vector<1x2xf32>
    %4 = arith.divf %3, %2 : vector<1x2xf32>
    %5 = arith.mulf %4, %1 : vector<1x2xf32>
    %cst_3 = arith.constant 1.000000e+00 : f32
    %6 = vector.broadcast %cst_3 : f32 to vector<1x2xf32>
    %7 = arith.addf %6, %2 : vector<1x2xf32>
    %8 = math.log %7 : vector<1x2xf32>
    %9 = arith.addf %5, %8 : vector<1x2xf32>
    %10 = vector.shape_cast %9 : vector<1x2xf32> to vector<1x1x2xf32>
    %cst_4 = arith.constant dense<0.000000e+00> : vector<1xf32>
    %11 = vector.multi_reduction <add>, %10, %cst_4 [1, 2] : vector<1x1x2xf32> to vector<1xf32>
    %12 = vector.shape_cast %11 : vector<1xf32> to vector<1x1x1xf32>
    %13 = vector.extract %12[0, 0, 0] : f32 from vector<1x1x1xf32>
    %c0_5 = arith.constant 0 : index
    %c0_6 = arith.constant 0 : index
    %14 = memref.load %arg2[%c0_5, %c0_6] : memref<1x1xf32, #tpu.memory_space<smem>>
    memref.store %13, %arg2[%c0_5, %c0_6] : memref<1x1xf32, #tpu.memory_space<smem>>
    return
  }
}

</mosaic_0001>

<bundles_post_ra>
// kernel: tpu_custom_call.1
= control target key start
LH: loop header
LB: loop body
LE: loop exit
PB: predicated region body
PF: predicated region fallthrough
CT: control target
= control target key end

     0   :  { %7 = vsyncpa [#allocation3], 0  ;;  %s149_s0 = inlined_call_operand.hbm [shape: f32[1,2], index: 0, kind: input, shape index: {}]   ;;  %s150_s1 = inlined_call_operand.vmem [shape: f32[1,2], index: 1, kind: input, shape index: {}]   ;;  %s151_s2 = inlined_call_operand.hbm [shape: f32[1,1], index: 2, kind: output, shape index: {}]  }
   0x1   :  { %8 = vsyncpa [#allocation4], 0  ;;  %s105_s9 = smov [#allocation2]   ;;  %s69_s13 = scalar_lea.hbm %s149_s0, 16 }
   0x2   :  { %s15_s10 = sshll.u32 %s105_s9, 4  ;;  %p70_p0 = scmp.ne.s32.totalorder %s149_s0, %s69_s13  ;;  %s16_s10 = int_to_ptr.vmem [resolvable:$true] %s15_s10 }
   0x3   :  { %p73_p1 = scmp.lt.u32.totalorder %s69_s13, %s149_s0 }
   0x5   :  { %p75_p2 = pnand %p73_p1, %p70_p0 }
   0x7   :  { %78 = shalt.err (!%p75_p2)
}
   0x8   :  { %s79_s18 = scalar_lea.vmem %s16_s10, 16  ;;  %s83_s19 = scalar_lea.vmem %s16_s10, 32 }
   0x9   :  { %p80_p3 = scmp.ne.s32.totalorder %s16_s10, %s79_s18  ;;  %p84_p4 = scmp.lt.s32.totalorder %s16_s10, %s16_s10 }
   0xa   :  { %p85_p5 = scmp.lt.s32.totalorder %s83_s19, %s79_s18 }
   0xc   :  { %p86_p6 = por %p85_p5, %p84_p4 }
   0xe   :  { %p87_p7 = pnand %p86_p6, %p80_p3 }
  0x10   :  { %90 = shalt.err (!%p87_p7)
}
  0x11   :  { %18 = dma.hbm_to_vmem [thread:$0]  %s149_s0, 16, %s16_s10, [#allocation3]  }
  0x12   :  { %101 = dma.done.wait [#allocation3], 16  }
  0x13   :  { %102 = vsyncadd [#allocation3], 4294967280  ;;  %v24_v0 = vld [vmem:[#allocation2] sm:$0x1]  ;;  %vm34_vm0 = vcmask 8192   ;;  %s91_s25 = scalar_lea.hbm %s151_s2, 16 }
  0x14   :  { %v26_v1 = vmul.f32 %v24_v0, %v24_v0  ;;  %v25_v4 = vld [vmem:[%s150_s1] sm:$0x1]  ;;  %p92_p8 = scmp.ne.s32.totalorder %s151_s2, %s91_s25  ;;  %p95_p9 = scmp.lt.u32.totalorder %s91_s25, %s151_s2 }
  0x16   :  { %65 = vrcp.f32 %v26_v1  ;;  %v30_v2 = vadd.f32 1.0, %v26_v1  ;;  %p97_p10 = pnand %p95_p9, %p92_p8 }
  0x18   :  { %67 = vlog2.f32 %v30_v2 }
  0x20   :  { %v66_v3 = vpop.eup %65 }
  0x21   :  { %v28_v5 = vmul.f32 0.5, %v66_v3 }
  0x22   :  { %v68_v6 = vpop.eup %67 }
  0x23   :  { %v29_v7 = vmul.f32 %v28_v5, %v25_v4  ;;  %v32_v8 = vmul.f32 0.6931472, %v68_v6 }
  0x25   :  { %v33_v9 = vadd.f32 %v32_v8, %v29_v7 }
  0x27   :  { %v35_v10 = vsel %vm34_vm0, %v33_v9, 0.0 }
  0x28   :  { %36 = vadd.xlane.f32.xlu0 %v35_v10 }
  0xb5   :  { %v37_v11 = vpop.xlane.xlu0 %36 }
  0xb6   :  { %v38_v12 = vrot.slane %v37_v11, 4 }
  0xb8   :  { %v39_v13 = vadd.f32 %v38_v12, %v37_v11 }
  0xba   :  { %v40_v14 = vrot.slane %v39_v13, 2 }
  0xbc   :  { %v41_v15 = vadd.f32 %v40_v14, %v39_v13 }
  0xbe   :  { %v42_v16 = vrot.slane %v41_v15, 1 }
  0xc0   :  { %v43_v17 = vadd.f32 %v42_v16, %v41_v15 }
  0xc2   :  { %61 = vpush %v43_v17 }
  0xf3   :  { %s62_s0 = spop %61 }
  0xf4   :  { %46 = sst [smem:[#allocation5]] %s62_s0 }
  0xf5   :  { %100 = shalt.err (!%p97_p10)
}
  0xf6   :  { %s106_s30 = smov [#allocation5]  }
  0xf7   :  { %54 = dma.smem_to_hbm %s106_s30, 16, %s151_s2, [#allocation4]  }
  0xf8   :  { %103 = dma.done.wait [#allocation4], 16  }
  0xf9   :  { %104 = vsyncadd [#allocation4], 4294967280 }
  0xfa   :  { %58 = sfence }
  0xfb   :  { %59 = vsyncpa [#allocation3], 1 }
  0xfc   :  { %60 = vsyncpa [#allocation4], 1 }

</bundles_post_ra>
